<compile_context>
chip_gen: v6e
topology: v6e:2x2x1
jax: 0.10.0
libtpu: 0.0.40
codegen_flags: <defaults>
</compile_context>

<pallas_src>
import math

import jax
import jax.numpy as jnp
from jax.experimental import pallas as pl
from jax.experimental.pallas import tpu as pltpu

_MIB = 1024 * 1024


def _ceil_to(x, m):
    return ((x + m - 1) // m) * m


def _device_vmem_bytes():
    """Per-core VMEM capacity; conservative 64 MiB (v7x) fallback."""
    try:
        info = pltpu.get_tpu_info()
        v = getattr(info, "vmem_capacity_bytes", None)
        if v:
            return int(min(int(v), 128 * _MIB))
    except Exception:
        pass
    return 64 * _MIB


# --------------------------- kernel bodies ---------------------------------

def _clip_mlp_kernel_resident(x_ref, w1_ref, b1_ref, w2_ref, b2_ref, o_ref):
    """Single pass: full W1/W2 resident in VMEM (constant index maps ->
    weights DMA'd once). One token tile per grid step."""
    # fc1: (tm, H) @ (H, I) -> f32
    h = jnp.dot(x_ref[...], w1_ref[...], preferred_element_type=jnp.float32)
    h = h + b1_ref[...]                          # f32 bias add
    h = h * jax.nn.sigmoid(1.702 * h)            # quick_gelu (f32)
    h = h.astype(w2_ref.dtype)                   # compute dtype for fc2 MXU
    # fc2: (tm, I) @ (I, H) -> f32, then bias + cast
    out = jnp.dot(h, w2_ref[...], preferred_element_type=jnp.float32)
    o_ref[...] = (out + b2_ref[...]).astype(o_ref.dtype)


def _clip_mlp_kernel_tiled(x_ref, w1_ref, b1_ref, w2_ref, b2_ref, o_ref,
                           acc_ref):
    """Intermediate-dim tiled path: fc2 partial sums accumulated in f32 over
    the inner ("arbitrary") grid axis. First step writes acc directly."""
    ii = pl.program_id(1)

    h = jnp.dot(x_ref[...], w1_ref[...], preferred_element_type=jnp.float32)
    h = h + b1_ref[...]                          # (1, ti) f32 broadcast
    h = h * jax.nn.sigmoid(1.702 * h)            # quick_gelu (f32)
    h = h.astype(w2_ref.dtype)
    partial = jnp.dot(h, w2_ref[...], preferred_element_type=jnp.float32)

    @pl.when(ii == 0)
    def _():
        acc_ref[...] = partial                   # no zero-init round-trip

    @pl.when(ii > 0)
    def _():
        acc_ref[...] += partial

    @pl.when(ii == pl.num_programs(1) - 1)
    def _():
        o_ref[...] = (acc_ref[...] + b2_ref[...]).astype(o_ref.dtype)


# --------------------------- tiling helpers ---------------------------------

def _token_tile(M, tm_cap, align):
    """Token tile size that minimizes padding; prefers an even tile count
    (v7x 2-TensorCore balance) as long as each tile keeps >= 128 rows."""
    n = max(1, math.ceil(M / max(tm_cap, align)))
    if n % 2 == 1 and math.ceil(M / (n + 1)) >= 128:
        n += 1
    return _ceil_to(max(1, math.ceil(M / n)), align)


def _vmem_estimate(tm, ti, H, dbytes, needs_acc):
    """Rough VMEM bytes: double-buffered streamed blocks + materialized
    (tm, ti) intermediates (+ f32 accumulator for the tiled path)."""
    est = (2 * tm * H * dbytes       # x tile
           + 2 * H * ti * dbytes     # W1 block
           + 2 * ti * 4              # b1 block (f32)
           + 2 * ti * H * dbytes     # W2 block
           + 2 * H * 4               # b2
           + 2 * tm * H * dbytes)    # out tile
    est += tm * ti * (4 + dbytes) * 2   # f32 h + compute-dtype h + slack
    if needs_acc:
        est += tm * H * 4
    return est


# --------------------------- public API --------------------------------------

def prepare_clip_mlp_params(w1, b1, w2, b2, compute_dtype=jnp.bfloat16):
    """Cast parameters once at setup time (avoids a per-call weight cast).

    Expects weights already in (in, out) layout, i.e. torch fc.weight.T:
      w1: (H, I), b1: (I,), w2: (I, H), b2: (H,).
    Biases are kept in f32 for accurate accumulation.
    """
    return (jnp.asarray(w1).astype(compute_dtype),
            jnp.asarray(b1).astype(jnp.float32),
            jnp.asarray(w2).astype(compute_dtype),
            jnp.asarray(b2).astype(jnp.float32))


def clip_mlp(hidden_states, w1, b1, w2, b2, *, compute_dtype=jnp.bfloat16,
             tm=None, ti=None):
    """CLIPMLP forward.

    hidden_states: (..., H); output keeps its dtype and shape.
    w1: (H, I), b1: (I,)   fc1 (weight laid out (in, out) = torch weight.T)
    w2: (I, H), b2: (H,)   fc2
    compute_dtype: MXU dtype for both matmuls (default bf16, f32 accumulate).
        Pass None to inherit w1.dtype (use prepare_clip_mlp_params to cast
        weights once instead of per call).
    tm / ti: optional token-tile / intermediate-tile overrides.
    """
    orig_shape = hidden_states.shape
    H = orig_shape[-1]
    I = w1.shape[1]
    out_dtype = hidden_states.dtype

    if compute_dtype is None:
        compute_dtype = w1.dtype
    x = hidden_states.astype(compute_dtype)
    if w1.dtype != compute_dtype:
        w1 = w1.astype(compute_dtype)
    if w2.dtype != compute_dtype:
        w2 = w2.astype(compute_dtype)
    b1_2d = b1.astype(jnp.float32).reshape(1, I)
    b2_2d = b2.astype(jnp.float32).reshape(1, H)

    dbytes = jnp.dtype(compute_dtype).itemsize
    align = max(8, 32 // max(dbytes, 1))        # sublane packing (f32:8, bf16:16)

    M = 1
    for d in orig_shape[:-1]:
        M *= d
    x2d = x.reshape(M, H)

    # ---- VMEM planning budget (clamped to the real device VMEM) -----------
    device_vmem = _device_vmem_bytes()
    budget = max(16 * _MIB, device_vmem - 8 * _MIB)

    if tm is not None:
        tm_caps = [int(tm)]
    else:
        tm_caps = [512, 256, 128] if dbytes <= 2 else [384, 256, 128]

    if ti is not None:
        ti = int(ti)
        if I % ti != 0 or (ti != I and ti % 128 != 0):
            ti = I                               # only legal fallback
    ti_cands = ([ti] if ti is not None
                else [I] + [t for t in (2048, 1024, 512, 256, 128)
                            if t < I and I % t == 0])

    chosen = None
    # Phase 1: prefer full weight residency (weights DMA'd from HBM once).
    if ti is None or ti == I:
        for cap in tm_caps:
            tm_e = _token_tile(M, cap, align)
            if _vmem_estimate(tm_e, I, H, dbytes, False) <= budget:
                chosen = (tm_e, I)
                break
    # Phase 2: tile the intermediate dimension with an f32 accumulator.
    if chosen is None:
        for cap in tm_caps:
            tm_e = _token_tile(M, cap, align)
            for ti_e in ti_cands:
                if _vmem_estimate(tm_e, ti_e, H, dbytes, ti_e != I) <= budget:
                    chosen = (tm_e, ti_e)
                    break
            if chosen is not None:
                break
    if chosen is None:
        # Last resort: smallest legal tiles.
        chosen = (_token_tile(M, align, align), ti_cands[-1])
    tm_eff, ti_eff = chosen

    n_m = max(1, -(-M // tm_eff))
    M_pad = n_m * tm_eff
    if M_pad != M:
        x2d = jnp.pad(x2d, ((0, M_pad - M), (0, 0)))
    n_i = 1 if ti_eff == I else I // ti_eff

    est = _vmem_estimate(tm_eff, ti_eff, H, dbytes, n_i > 1)
    vmem_limit = int(min(max(device_vmem - 2 * _MIB, 32 * _MIB),
                         max(32 * _MIB, int(est * 1.25))))

    if n_i == 1:
        # Single-pass, weight-resident kernel (weights fetched once).
        out2d = pl.pallas_call(
            _clip_mlp_kernel_resident,
            out_shape=jax.ShapeDtypeStruct((M_pad, H), out_dtype),
            grid_spec=pltpu.PrefetchScalarGridSpec(
                num_scalar_prefetch=0,
                grid=(n_m,),
                in_specs=[
                    pl.BlockSpec((tm_eff, H), lambda i: (i, 0)),  # x tile
                    pl.BlockSpec((H, I), lambda i: (0, 0)),       # W1 (resident)
                    pl.BlockSpec((1, I), lambda i: (0, 0)),       # b1
                    pl.BlockSpec((I, H), lambda i: (0, 0)),       # W2 (resident)
                    pl.BlockSpec((1, H), lambda i: (0, 0)),       # b2
                ],
                out_specs=pl.BlockSpec((tm_eff, H), lambda i: (i, 0)),
            ),
            compiler_params=pltpu.CompilerParams(
                dimension_semantics=("parallel",),
                vmem_limit_bytes=vmem_limit,
            ),
        )(x2d, w1, b1_2d, w2, b2_2d)
    else:
        # I-tiled kernel with f32 accumulator over the inner reduction axis.
        out2d = pl.pallas_call(
            _clip_mlp_kernel_tiled,
            out_shape=jax.ShapeDtypeStruct((M_pad, H), out_dtype),
            grid_spec=pltpu.PrefetchScalarGridSpec(
                num_scalar_prefetch=0,
                grid=(n_m, n_i),
                in_specs=[
                    pl.BlockSpec((tm_eff, H), lambda i, ii: (i, 0)),   # x tile
                    pl.BlockSpec((H, ti_eff), lambda i, ii: (0, ii)),  # W1 chunk
                    pl.BlockSpec((1, ti_eff), lambda i, ii: (0, ii)),  # b1 chunk
                    pl.BlockSpec((ti_eff, H), lambda i, ii: (ii, 0)),  # W2 chunk
                    pl.BlockSpec((1, H), lambda i, ii: (0, 0)),        # b2
                ],
                out_specs=pl.BlockSpec((tm_eff, H), lambda i, ii: (i, 0)),
                scratch_shapes=[pltpu.VMEM((tm_eff, H), jnp.float32)],
            ),
            compiler_params=pltpu.CompilerParams(
                dimension_semantics=("parallel", "arbitrary"),
                vmem_limit_bytes=vmem_limit,
            ),
        )(x2d, w1, b1_2d, w2, b2_2d)

    if M_pad != M:
        out2d = out2d[:M]
    return out2d.reshape(orig_shape)


def clip_mlp_reference(hidden_states, w1, b1, w2, b2):
    h = hidden_states @ w1 + b1
    h = h * jax.nn.sigmoid(1.702 * h)
    return h @ w2 + b2


if __name__ == "__main__":
    # Small config consistent with CLIPMLP (intermediate = 4 * hidden).
    # Real CLIP dims (768/1024 x 3072/4096) are 128-aligned; the tiling logic
    # (residency decision, tm/ti search) is exercised the same way here.
    batch, seq, hidden, intermediate = 2, 8, 64, 256

    key = jax.random.PRNGKey(0)
    kx, k1, kb1, k2, kb2 = jax.random.split(key, 5)

    x = jax.random.normal(kx, (batch, seq, hidden), dtype=jnp.float32)

    # PyTorch nn.Linear stores weight as (out, in); here weights are kept as
    # (in, out) = torch_weight.T so the kernel computes x @ W + b.
    w1 = jax.random.normal(k1, (hidden, intermediate), dtype=jnp.float32) * 0.02
    b1 = jax.random.normal(kb1, (intermediate,), dtype=jnp.float32) * 0.02
    w2 = jax.random.normal(k2, (intermediate, hidden), dtype=jnp.float32) * 0.02
    b2 = jax.random.normal(kb2, (hidden,), dtype=jnp.float32) * 0.02

    ref = clip_mlp_reference(x, w1, b1, w2, b2)

    # 1) f32 compute path (tight tolerance) -> weight-resident single-pass kernel.
    out_f32 = jax.block_until_ready(
        clip_mlp(x, w1, b1, w2, b2, compute_dtype=jnp.float32))
    assert out_f32.shape == x.shape
    assert jnp.allclose(out_f32, ref, atol=1e-5, rtol=1e-5), "fp32 mismatch"

    # 2) default bf16 MXU path with pre-cast ("prepared") weights.
    pw1, pb1, pw2, pb2 = prepare_clip_mlp_params(w1, b1, w2, b2)
    out_bf16 = jax.block_until_ready(clip_mlp(x, pw1, pb1, pw2, pb2))
    assert out_bf16.dtype == x.dtype
    assert jnp.allclose(out_bf16, ref, atol=2e-2, rtol=0.0), "bf16 mismatch"

    # 3) ragged token count (exercises the token-padding path).
    x_r = x[:, :7, :]
    out_r = jax.block_until_ready(
        clip_mlp(x_r, w1, b1, w2, b2, compute_dtype=jnp.float32))
    ref_r = clip_mlp_reference(x_r, w1, b1, w2, b2)
    assert out_r.shape == x_r.shape
    assert jnp.allclose(out_r, ref_r, atol=1e-5, rtol=1e-5), "ragged mismatch"

    # 4) forced intermediate tiling (exercises the f32-accumulator kernel).
    out_t = jax.block_until_ready(
        clip_mlp(x, w1, b1, w2, b2, compute_dtype=jnp.float32, ti=128))
    assert jnp.allclose(out_t, ref, atol=1e-5, rtol=1e-5), "tiled mismatch"

    print("KERNEL_OK")
</pallas_src>

<mosaic_0001>
module attributes {stable_mosaic.version = 11 : i64} {
  func.func @_clip_mlp_kernel_resident(%arg0: i32, %arg1: memref<16x64xf32, #tpu.memory_space<vmem>>, %arg2: memref<64x256xf32, #tpu.memory_space<vmem>>, %arg3: memref<1x256xf32, #tpu.memory_space<vmem>>, %arg4: memref<256x64xf32, #tpu.memory_space<vmem>>, %arg5: memref<1x64xf32, #tpu.memory_space<vmem>>, %arg6: memref<16x64xf32, #tpu.memory_space<vmem>>) attributes {dimension_semantics = [#tpu.dimension_semantics<parallel>], iteration_bounds = array<i64: 1>, scalar_prefetch = 0 : i64, scratch_operands = 0 : i64, tpu.core_type = #tpu.core_type<tc>, window_params = [{transform_indices = @transform_0, window_bounds = array<i64: 16, 64>}, {pipeline_mode = #tpu.pipeline_mode<synchronous>, transform_indices = @transform_1, window_bounds = array<i64: 64, 256>}, {pipeline_mode = #tpu.pipeline_mode<synchronous>, transform_indices = @transform_2, window_bounds = array<i64: 1, 256>}, {pipeline_mode = #tpu.pipeline_mode<synchronous>, transform_indices = @transform_3, window_bounds = array<i64: 256, 64>}, {pipeline_mode = #tpu.pipeline_mode<synchronous>, transform_indices = @transform_4, window_bounds = array<i64: 1, 64>}, {transform_indices = @transform_5, window_bounds = array<i64: 16, 64>}]} {
    %c0 = arith.constant 0 : index
    %c0_0 = arith.constant 0 : index
    %0 = vector.load %arg1[%c0, %c0_0] : memref<16x64xf32, #tpu.memory_space<vmem>>, vector<16x64xf32>
    %c0_1 = arith.constant 0 : index
    %c0_2 = arith.constant 0 : index
    %1 = vector.load %arg2[%c0_1, %c0_2] : memref<64x256xf32, #tpu.memory_space<vmem>>, vector<64x256xf32>
    %cst = arith.constant dense<0.000000e+00> : vector<16x256xf32>
    %2 = tpu.matmul %0, %1, %cst {dimension_numbers = #tpu.dot_dimension_numbers<[1], [0], [0], [1], [0, 0, 1, 1], [], []>} : vector<16x64xf32>, vector<64x256xf32>, vector<16x256xf32> -> vector<16x256xf32>
    %c0_3 = arith.constant 0 : index
    %c0_4 = arith.constant 0 : index
    %3 = vector.load %arg3[%c0_3, %c0_4] : memref<1x256xf32, #tpu.memory_space<vmem>>, vector<1x256xf32>
    %4 = vector.broadcast %3 : vector<1x256xf32> to vector<16x256xf32>
    %5 = arith.addf %2, %4 : vector<16x256xf32>
    %cst_5 = arith.constant 1.702000e+00 : f32
    %6 = vector.broadcast %cst_5 : f32 to vector<16x256xf32>
    %7 = arith.mulf %6, %5 : vector<16x256xf32>
    %8 = arith.negf %7 : vector<16x256xf32>
    %9 = math.exp %8 : vector<16x256xf32>
    %cst_6 = arith.constant 1.000000e+00 : f32
    %10 = vector.broadcast %cst_6 : f32 to vector<16x256xf32>
    %11 = arith.addf %10, %9 : vector<16x256xf32>
    %12 = arith.divf %10, %11 : vector<16x256xf32>
    %13 = arith.mulf %5, %12 : vector<16x256xf32>
    %c0_7 = arith.constant 0 : index
    %c0_8 = arith.constant 0 : index
    %14 = vector.load %arg4[%c0_7, %c0_8] : memref<256x64xf32, #tpu.memory_space<vmem>>, vector<256x64xf32>
    %cst_9 = arith.constant dense<0.000000e+00> : vector<16x64xf32>
    %15 = tpu.matmul %13, %14, %cst_9 {dimension_numbers = #tpu.dot_dimension_numbers<[1], [0], [0], [1], [0, 0, 1, 1], [], []>} : vector<16x256xf32>, vector<256x64xf32>, vector<16x64xf32> -> vector<16x64xf32>
    %c0_10 = arith.constant 0 : index
    %c0_11 = arith.constant 0 : index
    %16 = vector.load %arg5[%c0_10, %c0_11] : memref<1x64xf32, #tpu.memory_space<vmem>>, vector<1x64xf32>
    %17 = vector.broadcast %16 : vector<1x64xf32> to vector<16x64xf32>
    %18 = arith.addf %15, %17 : vector<16x64xf32>
    %c0_12 = arith.constant 0 : index
    %c0_13 = arith.constant 0 : index
    %19 = vector.load %arg6[%c0_12, %c0_13] : memref<16x64xf32, #tpu.memory_space<vmem>>, vector<16x64xf32>
    tpu.vector_store %arg6[%c0_12, %c0_13], %18 {strides = array<i32>} : memref<16x64xf32, #tpu.memory_space<vmem>>, vector<16x64xf32>,
    return
  }
  func.func @transform_0(%arg0: i32) -> (i32, i32) {
    %c0_i32 = arith.constant 0 : i32
    %c0_i32_0 = arith.constant 0 : i32
    return %arg0, %c0_i32 : i32, i32
  }
  func.func @transform_1(%arg0: i32) -> (i32, i32) {
    %c0_i32 = arith.constant 0 : i32
    %c0_i32_0 = arith.constant 0 : i32
    %c0_i32_1 = arith.constant 0 : i32
    return %c0_i32, %c0_i32_0 : i32, i32
  }
  func.func @transform_2(%arg0: i32) -> (i32, i32) {
    %c0_i32 = arith.constant 0 : i32
    %c0_i32_0 = arith.constant 0 : i32
    %c0_i32_1 = arith.constant 0 : i32
    return %c0_i32, %c0_i32_0 : i32, i32
  }
  func.func @transform_3(%arg0: i32) -> (i32, i32) {
    %c0_i32 = arith.constant 0 : i32
    %c0_i32_0 = arith.constant 0 : i32
    %c0_i32_1 = arith.constant 0 : i32
    return %c0_i32, %c0_i32_0 : i32, i32
  }
  func.func @transform_4(%arg0: i32) -> (i32, i32) {
    %c0_i32 = arith.constant 0 : i32
    %c0_i32_0 = arith.constant 0 : i32
    %c0_i32_1 = arith.constant 0 : i32
    return %c0_i32, %c0_i32_0 : i32, i32
  }
  func.func @transform_5(%arg0: i32) -> (i32, i32) {
    %c0_i32 = arith.constant 0 : i32
    %c0_i32_0 = arith.constant 0 : i32
    return %arg0, %c0_i32 : i32, i32
  }
}

</mosaic_0001>

<bundles_post_ra>
// kernel: tpu_custom_call.1
= control target key start
LH: loop header
LB: loop body
LE: loop exit
PB: predicated region body
PF: predicated region fallthrough
CT: control target
= control target key end

     0   :  { %v386_v4 = vmov 0.0   ;;  %s583_s0 = inlined_call_operand.vmem [shape: f32[16,64], index: 0, kind: input, shape index: {}]   ;;  %s584_s1 = inlined_call_operand.vmem [shape: f32[64,256], index: 1, kind: input, shape index: {}]   ;;  %s585_s2 = inlined_call_operand.vmem [shape: f32[1,256], index: 2, kind: input, shape index: {}]   ;;  %s586_s3 = inlined_call_operand.vmem [shape: f32[256,64], index: 3, kind: input, shape index: {}]   ;;  %s587_s4 = inlined_call_operand.vmem [shape: f32[1,64], index: 4, kind: input, shape index: {}]   ;;  %s588_s5 = inlined_call_operand.hbm [shape: f32[16,64], index: 5, kind: output, shape index: {}]  }
   0x1   :  { %v38_v0 = vld [vmem:[%s584_s1 + $0x78] sm:$0xff]  ;;  %v37_v1 = vld [vmem:[%s584_s1 + $0x70] sm:$0xff]  ;;  %v36_v2 = vld [vmem:[%s584_s1 + $0x68] sm:$0xff]  ;;  %122 = vmatprep.mubr.f32.mxu0 %v386_v4 }
   0x2   :  { %74 = vmatprep.subr.mxu0 %v38_v0  ;;  %v35_v3 = vld [vmem:[%s584_s1 + $0x60] sm:$0xff]  ;;  %v34_v5 = vld [vmem:[%s584_s1 + $0x58] sm:$0xff]  ;;  %v33_v6 = vld [vmem:[%s584_s1 + $0x50] sm:$0xff] }
   0x3   :  { %75 = vmatpush1.msra.mxu0 %v37_v1  ;;  %v32_v7 = vld [vmem:[%s584_s1 + $0x48] sm:$0xff]  ;;  %v31_v8 = vld [vmem:[%s584_s1 + $0x40] sm:$0xff]  ;;  %v30_v9 = vld [vmem:[%s584_s1 + $0x38] sm:$0xff] }
   0x4   :  { %76 = vmatprep.subr.mxu0 %v36_v2 }
   0x5   :  { %77 = vmatpush1.msra.mxu0 %v35_v3 }
   0x6   :  { %78 = vmatprep.subr.mxu0 %v34_v5 }
   0x7   :  { %79 = vmatpush1.msra.mxu0 %v33_v6 }
   0x8   :  { %10 = vsyncpa [#allocation3], 0  ;;  %80 = vmatprep.subr.mxu0 %v32_v7  ;;  %v29_v10 = vld [vmem:[%s584_s1 + $0x30] sm:$0xff]  ;;  %v28_v11 = vld [vmem:[%s584_s1 + $0x28] sm:$0xff]  ;;  %vm51_vm0 = vcmask 523264   ;;  %v41_v51 = vlaneseq  ;;  %s387_s14 = smov [#allocation2]  }
   0x9   :  { %81 = vmatpush1.msra.mxu0 %v31_v8  ;;  %v27_v12 = vld [vmem:[%s584_s1 + $0x20] sm:$0xff]  ;;  %v26_v13 = vld [vmem:[%s584_s1 + $0x18] sm:$0xff]  ;;  %v25_v14 = vld [vmem:[%s584_s1 + $0x10] sm:$0xff]  ;;  %s288_s15 = sshll.u32 %s387_s14, 4  ;;  %s289_s15 = int_to_ptr.vmem [resolvable:$true] %s288_s15 }
   0xa   :  { %82 = vmatprep.subr.mxu0 %v30_v9  ;;  %v24_v15 = vld [vmem:[%s584_s1 + $0x8] sm:$0xff]  ;;  %v23_v16 = vld [vmem:[%s584_s1] sm:$0xff]  ;;  %v198_v19 = vld [vmem:[%s586_s3 + $0xf8] sm:$0xff]  ;;  %v42_v52 = vshrl.u32 %v41_v51, 7  ;;  %s364_s16 = scalar_lea.vmem %s289_s15, 256  ;;  %p369_p1 = scmp.lt.s32.totalorder %s289_s15, %s289_s15 }
   0xb   :  { %83 = vmatpush1.msra.mxu0 %v29_v10  ;;  %v21_v17 = vld [vmem:[%s583_s0] sm:$0xff]  ;;  %v22_v18 = vld [vmem:[%s583_s0 + $0x8] sm:$0xff]  ;;  %306 = vmatprep.subr.mxu1 %v198_v19  ;;  %v182_v20 = vld [vmem:[%s586_s3 + $0x78] sm:$0xff]  ;;  %p365_p0 = scmp.ne.s32.totalorder %s289_s15, %s364_s16  ;;  %p370_p2 = scmp.lt.s32.totalorder %s364_s16, %s364_s16 }
   0xc   :  { %84 = vmatprep.subr.mxu0 %v28_v11  ;;  %307 = vmatpush3.msra.mxu1 %v182_v20  ;;  %v197_v21 = vld [vmem:[%s586_s3 + $0xf0] sm:$0xff]  ;;  %v196_v23 = vld [vmem:[%s586_s3 + $0xe8] sm:$0xff]  ;;  %v195_v25 = vld [vmem:[%s586_s3 + $0xe0] sm:$0xff]  ;;  %v43_v53 = vsub.s32 0, %v42_v52  ;;  %v47_v55 = vsub.s32 1, %v42_v52 }
   0xd   :  { %85 = vmatpush1.msra.mxu0 %v27_v12  ;;  %308 = vmatprep.subr.mxu1 %v197_v21  ;;  %v181_v22 = vld [vmem:[%s586_s3 + $0x70] sm:$0xff]  ;;  %v180_v24 = vld [vmem:[%s586_s3 + $0x68] sm:$0xff]  ;;  %v179_v26 = vld [vmem:[%s586_s3 + $0x60] sm:$0xff]  ;;  %p371_p3 = por %p370_p2, %p369_p1 }
   0xe   :  { %86 = vmatprep.subr.mxu0 %v26_v13  ;;  %309 = vmatpush3.msra.mxu1 %v181_v22  ;;  %v194_v27 = vld [vmem:[%s586_s3 + $0xd8] sm:$0xff]  ;;  %v193_v29 = vld [vmem:[%s586_s3 + $0xd0] sm:$0xff]  ;;  %v192_v31 = vld [vmem:[%s586_s3 + $0xc8] sm:$0xff] }
   0xf   :  { %87 = vmatpush1.msra.mxu0 %v25_v14  ;;  %310 = vmatprep.subr.mxu1 %v196_v23  ;;  %v178_v28 = vld [vmem:[%s586_s3 + $0x58] sm:$0xff]  ;;  %v177_v30 = vld [vmem:[%s586_s3 + $0x50] sm:$0xff]  ;;  %v176_v32 = vld [vmem:[%s586_s3 + $0x48] sm:$0xff]  ;;  %p372_p4 = pnand %p371_p3, %p365_p0 }
  0x10   :  { %88 = vmatprep.subr.mxu0 %v24_v15  ;;  %311 = vmatpush3.msra.mxu1 %v180_v24  ;;  %v191_v33 = vld [vmem:[%s586_s3 + $0xc0] sm:$0xff]  ;;  %v190_v35 = vld [vmem:[%s586_s3 + $0xb8] sm:$0xff]  ;;  %v189_v37 = vld [vmem:[%s586_s3 + $0xb0] sm:$0xff] }
  0x11   :  { %89 = vmatpush1.msra.mxu0 %v23_v16  ;;  %312 = vmatprep.subr.mxu1 %v195_v25  ;;  %v175_v34 = vld [vmem:[%s586_s3 + $0x40] sm:$0xff]  ;;  %v174_v36 = vld [vmem:[%s586_s3 + $0x38] sm:$0xff]  ;;  %v173_v38 = vld [vmem:[%s586_s3 + $0x30] sm:$0xff] }
  0x12   :  { %299 = vmatmul.mubr.msk.f32.vlgmr.msra.gmra.mxu0 %vm51_vm0, %v21_v17  ;;  %313 = vmatpush3.msra.mxu1 %v179_v26  ;;  %v188_v39 = vld [vmem:[%s586_s3 + $0xa8] sm:$0xff]  ;;  %v187_v41 = vld [vmem:[%s586_s3 + $0xa0] sm:$0xff]  ;;  %v186_v43 = vld [vmem:[%s586_s3 + $0x98] sm:$0xff] }
  0x13   :  { %128 = vmatprep.mubr.f32.mxu0 %v386_v4  ;;  %314 = vmatprep.subr.mxu1 %v194_v27  ;;  %v172_v40 = vld [vmem:[%s586_s3 + $0x28] sm:$0xff]  ;;  %v171_v42 = vld [vmem:[%s586_s3 + $0x20] sm:$0xff]  ;;  %v170_v44 = vld [vmem:[%s586_s3 + $0x18] sm:$0xff] }
  0x14   :  { %315 = vmatpush3.msra.mxu1 %v178_v28  ;;  %v185_v45 = vld [vmem:[%s586_s3 + $0x90] sm:$0xff]  ;;  %v184_v47 = vld [vmem:[%s586_s3 + $0x88] sm:$0xff]  ;;  %v183_v49 = vld [vmem:[%s586_s3 + $0x80] sm:$0xff] }
  0x15   :  { %316 = vmatprep.subr.mxu1 %v193_v29  ;;  %v169_v46 = vld [vmem:[%s586_s3 + $0x10] sm:$0xff]  ;;  %v168_v48 = vld [vmem:[%s586_s3 + $0x8] sm:$0xff]  ;;  %v167_v50 = vld [vmem:[%s586_s3] sm:$0xff] }
  0x16   :  { %300 = vmatmul.mubr.msk.f32.gmra.mxu0 %vm51_vm0, %v22_v18  ;;  %317 = vmatpush3.msra.mxu1 %v177_v30  ;;  %v39_v54 = vld [vmem:[%s585_s2] sm:$0x3] }
  0x17   :  { %318 = vmatprep.subr.mxu1 %v192_v31  ;;  %v44_v56 = vrot.slane %v39_v54, %v43_v53  ;;  %v48_v57 = vrot.slane %v39_v54, %v47_v55  ;;  %v305_v27 = vld [vmem:[%s587_s4] ss:$0 sm:$0xff] }
  0x18   :  { %319 = vmatpush3.msra.mxu1 %v176_v32 }
  0x19   :  { %320 = vmatprep.subr.mxu1 %v191_v33 }
  0x1a   :  { %321 = vmatpush3.msra.mxu1 %v175_v34 }
  0x1b   :  { %322 = vmatprep.subr.mxu1 %v190_v35 }
  0x1c   :  { %323 = vmatpush3.msra.mxu1 %v174_v36 }
  0x1d   :  { %324 = vmatprep.subr.mxu1 %v189_v37 }
  0x1e   :  { %325 = vmatpush3.msra.mxu1 %v173_v38 }
  0x1f   :  { %326 = vmatprep.subr.mxu1 %v188_v39 }
  0x20   :  { %327 = vmatpush3.msra.mxu1 %v172_v40 }
  0x21   :  { %328 = vmatprep.subr.mxu1 %v187_v41 }
  0x22   :  { %329 = vmatpush3.msra.mxu1 %v171_v42 }
  0x23   :  { %330 = vmatprep.subr.mxu1 %v186_v43 }
  0x24   :  { %331 = vmatpush3.msra.mxu1 %v170_v44 }
  0x25   :  { %332 = vmatprep.subr.mxu1 %v185_v45 }
  0x26   :  { %333 = vmatpush3.msra.mxu1 %v169_v46 }
  0x27   :  { %334 = vmatprep.subr.mxu1 %v184_v47 }
  0x28   :  { %335 = vmatpush3.msra.mxu1 %v168_v48 }
  0x29   :  { %336 = vmatprep.subr.mxu1 %v183_v49 }
  0x2a   :  { %337 = vmatpush3.msra.mxu1 %v167_v50 }
  0xd2   :  { %v124_v58 = vpop.f32.mrf.mxu0 }
  0xd3   :  { %v125_v59 = vadd.f32 %v124_v58, %v44_v56 }
  0xd4   :  { %v126_v60 = vpop.f32.mrf.mxu0 }
  0xd5   :  { %v301_v61 = vmul.f32 -1.702, %v125_v59  ;;  %v127_v62 = vadd.f32 %v126_v60, %v48_v57 }
  0xd6   :  { %v130_v63 = vpop.f32.mrf.mxu0 }
  0xd7   :  { %v143_v0 = vmul.f32 1.442695, %v301_v61  ;;  %v302_v1 = vmul.f32 -1.702, %v127_v62  ;;  %v131_v2 = vadd.f32 %v130_v63, %v44_v56 }
  0xd8   :  { %v132_v3 = vpop.f32.mrf.mxu0 }
  0xd9   :  { %348 = vpow2.f32 %v143_v0  ;;  %v145_v4 = vmul.f32 1.442695, %v302_v1  ;;  %v303_v5 = vmul.f32 -1.702, %v131_v2  ;;  %v133_v6 = vadd.f32 %v132_v3, %v48_v57 }
  0xdb   :  { %350 = vpow2.f32 %v145_v4  ;;  %v147_v7 = vmul.f32 1.442695, %v303_v5  ;;  %v304_v8 = vmul.f32 -1.702, %v133_v6 }
  0xdd   :  { %352 = vpow2.f32 %v147_v7  ;;  %v149_v9 = vmul.f32 1.442695, %v304_v8 }
  0xdf   :  { %354 = vpow2.f32 %v149_v9 }
  0xe6   :  { %v349_v10 = vpop.eup %348 }
  0xe7   :  { %v151_v11 = vadd.f32 1.0, %v349_v10 }
  0xe8   :  { %v351_v12 = vpop.eup %350 }
  0xe9   :  { %v152_v13 = vadd.f32 1.0, %v351_v12  ;;  %356 = vrcp.f32 %v151_v11 }
  0xea   :  { %v353_v14 = vpop.eup %352 }
  0xeb   :  { %358 = vrcp.f32 %v152_v13  ;;  %v153_v15 = vadd.f32 1.0, %v353_v14 }
  0xec   :  { %v355_v16 = vpop.eup %354 }
  0xed   :  { %v154_v17 = vadd.f32 1.0, %v355_v16  ;;  %360 = vrcp.f32 %v153_v15 }
  0xef   :  { %362 = vrcp.f32 %v154_v17 }
  0xf6   :  { %v357_v18 = vpop.eup %356 }
  0xf7   :  { %v163_v21 = vmul.f32 %v357_v18, %v125_v59 }
  0xf8   :  { %v359_v19 = vpop.eup %358 }
  0xf9   :  { %v164_v20 = vmul.f32 %v359_v19, %v127_v62 }
  0xfa   :  { %v361_v22 = vpop.eup %360 }
  0xfb   :  { %270 = vmatprep.mubr.f32.mxu1 %v164_v20  ;;  %v165_v25 = vmul.f32 %v361_v22, %v131_v2 }
  0xfc   :  { %v363_v23 = vpop.eup %362  ;;  %271 = vmatmul.mubr.f32.vlgmr.msra.gmra.mxu1 %v163_v21 }
  0xfd   :  { %v166_v24 = vmul.f32 %v363_v23, %v133_v6 }
  0xff   :  { %275 = vmatprep.mubr.f32.mxu1 %v166_v24 }
 0x100   :  { %276 = vmatmul.mubr.f32.gmra.mxu1 %v165_v25 }
 0x1bc   :  { %v338_v26 = vpop.f32.mrf.mxu1 }
 0x1be   :  { %v339_v28 = vpop.f32.mrf.mxu1 }
 0x1bf   :  { %v340_v29 = vadd.f32 %v339_v28, %v338_v26 }
 0x1c0   :  { %v341_v30 = vpop.f32.mrf.mxu1 }
 0x1c1   :  { %v273_v31 = vadd.f32 %v340_v29, %v305_v27 }
 0x1c2   :  { %v342_v32 = vpop.f32.mrf.mxu1 }
 0x1c3   :  { %281 = vst.msk [vmem:[#allocation2] sm:$0xff] %vm51_vm0, %v273_v31  ;;  %v343_v33 = vadd.f32 %v342_v32, %v341_v30 }
 0x1c5   :  { %v278_v34 = vadd.f32 %v343_v33, %v305_v27 }
 0x1c7   :  { %282 = vst.msk [vmem:[#allocation2 + $0x8] sm:$0xff] %vm51_vm0, %v278_v34 }
 0x1c8   :  { %375 = shalt.err (!%p372_p4)
}
 0x1c9   :  { %s388_s4 = smov 128   ;;  %s389_s17 = smov 8  }
 0x1ca   :  { %294 = dma.vmem_to_hbm [thread:$0]  %s289_s15, 256, %s588_s5, [#allocation3], %s388_s4, %s388_s4, %s389_s17  }
 0x1cb   :  { %384 = dma.done.wait [#allocation3], 256  }
 0x1cc   :  { %385 = vsyncadd [#allocation3], 4294967040 }
 0x1cd   :  { %298 = vsyncpa [#allocation3], 1 }

</bundles_post_ra>
